<compile_context>
chip_gen: v7x
topology: tpu7x:2x2x1
jax: 0.10.0
libtpu: 0.0.40
codegen_flags: <defaults>
</compile_context>

<pallas_src>
import functools
import math

import jax
import jax.numpy as jnp
from jax.experimental import pallas as pl
from jax.experimental.pallas import tpu as pltpu

# ----------------------------- small config -----------------------------
HIDDEN       = 64
NUM_HEADS    = 4
NUM_KV_HEADS = 2
HEAD_DIM     = HIDDEN // NUM_HEADS          # 16
GROUP        = NUM_HEADS // NUM_KV_HEADS    # 2
KV_DIM       = NUM_KV_HEADS * HEAD_DIM      # 32
QKV_DIM      = HIDDEN + 2 * KV_DIM          # 128 -> exactly one 128-lane vreg
ROPE_THETA   = 10000.0

BATCH = 2
SEQ   = 8
PAST  = 8
TOTAL = PAST + SEQ


# ----------------------------- fused Pallas kernel -----------------------------
def _fused_qwen2_attn_kernel(x_ref, w2_ref, b2_ref, cs_ref, mask_ref, past_ref,
                             woT_ref, bo_ref, out_ref, pres_ref, acc_ref, *,
                             seq, past_len):
    S, P = seq, past_len

    # (1) fused projection: [q|k|v | rot(q)|rot(k)|0] in one lane-dense MXU pass.
    slab = jnp.dot(x_ref[...], w2_ref[...],
                   preferred_element_type=jnp.float32) + b2_ref[...]     # (S, 256)

    # (2) RoPE as a single full-width VPU pass; V columns have cos=1, sin=0.
    qkv = slab[:, :QKV_DIM] * cs_ref[0] + slab[:, QKV_DIM:] * cs_ref[1]  # (S, 128)

    # (3) present-KV slab (T, 2*KV_DIM): bulk past copy + one new-row store.
    pres_ref[:P, :] = past_ref[...]
    pres_ref[P:, :] = qkv[:, HIDDEN:]          # new [k_g0|k_g1|v_g0|v_g1] rows

    kv = pres_ref[...]                         # (T, 2*KV_DIM) read back once
    mask = mask_ref[...]                       # (S, T) additive mask
    mask_g = jnp.concatenate([mask] * GROUP, axis=0)   # (GROUP*S, T), 8-row concat
    # TODO(synk): for known-causal decode masks, generate mask_g in-kernel from
    # broadcasted_iota + a past-length scalar instead of streaming it from HBM.

    # (4) GQA attention: GROUP query heads stacked along sublanes -> one score
    #     matmul + one PV matmul per kv head; results retire into acc_ref.
    for g in range(NUM_KV_HEADS):
        k_full = kv[:, g * HEAD_DIM:(g + 1) * HEAD_DIM]                     # (T, dh)
        v_full = kv[:, KV_DIM + g * HEAD_DIM:KV_DIM + (g + 1) * HEAD_DIM]   # (T, dh)
        q_g = jnp.concatenate(
            [qkv[:, (g * GROUP + hh) * HEAD_DIM:(g * GROUP + hh + 1) * HEAD_DIM]
             for hh in range(GROUP)], axis=0)                               # (G*S, dh)
        s = jax.lax.dot_general(q_g, k_full, (((1,), (1,)), ((), ())),
                                preferred_element_type=jnp.float32) + mask_g
        s = s - jnp.max(s, axis=-1, keepdims=True)
        p = jnp.exp(s)
        p = p * pl.reciprocal(jnp.sum(p, axis=-1, keepdims=True), approx=True)
        pv = jnp.dot(p, v_full, preferred_element_type=jnp.float32)         # (G*S, dh)
        for hh in range(GROUP):
            h = g * GROUP + hh
            acc_ref[:, h * HEAD_DIM:(h + 1) * HEAD_DIM] = pv[hh * S:(hh + 1) * S, :]

    # (5) output projection, one (S, H) matmul + store.
    out_ref[...] = (jnp.dot(acc_ref[...], woT_ref[...],
                            preferred_element_type=jnp.float32)
                    + bo_ref[...]).astype(out_ref.dtype)


# ----------------------------- RoPE tables (tiny JAX glue) -----------------------------
def rope_cos_sin_packed(position_ids):
    """position_ids: (B, S) -> packed (2, B*S, QKV_DIM) cos/sin, with identity
    (cos=1, sin=0) on the V columns so the kernel's wide FMA passes V through."""
    inv_freq = 1.0 / (ROPE_THETA ** (jnp.arange(0, HEAD_DIM, 2, dtype=jnp.float32)
                                     / HEAD_DIM))
    pos = position_ids.astype(jnp.float32).reshape(-1)              # (M,)
    freqs = pos[:, None] * inv_freq[None, :]                        # (M, dh/2)
    emb = jnp.concatenate([freqs, freqs], axis=-1)                  # (M, dh)
    cos, sin = jnp.cos(emb), jnp.sin(emb)
    n_rope = NUM_HEADS + NUM_KV_HEADS
    M = pos.shape[0]
    cos_w = jnp.concatenate([jnp.tile(cos, (1, n_rope)),
                             jnp.ones((M, KV_DIM), jnp.float32)], axis=-1)
    sin_w = jnp.concatenate([jnp.tile(sin, (1, n_rope)),
                             jnp.zeros((M, KV_DIM), jnp.float32)], axis=-1)
    return jnp.stack([cos_w, sin_w])                                # (2, M, 128)


# ----------------------------- param prep (done once) -----------------------------
def _rotate_half_weight_cols(wT, b):
    """Return (wT_rot, b_rot) such that x @ wT_rot + b_rot == rotate_half(x @ wT + b)."""
    d_in, n = wT.shape
    half = HEAD_DIM // 2
    w = wT.reshape(d_in, n // HEAD_DIM, HEAD_DIM)
    w_rot = jnp.concatenate([-w[..., half:], w[..., :half]], axis=-1).reshape(d_in, n)
    b2 = b.reshape(n // HEAD_DIM, HEAD_DIM)
    b_rot = jnp.concatenate([-b2[..., half:], b2[..., :half]], axis=-1).reshape(n)
    return w_rot, b_rot


def prepare_params(params):
    """Fuse q/k/v (+rotate-half copies) into one (H, 256) weight, fold 1/sqrt(dh)
    into the q columns, pre-transpose everything once at init."""
    scale = 1.0 / math.sqrt(HEAD_DIM)
    wqT = params["wq"].T * scale                                    # (H, H), pre-scaled
    bq = params["bq"] * scale
    wkT = params["wk"].T                                            # (H, KV_DIM)
    wvT = params["wv"].T                                            # (H, KV_DIM)
    wq_rot, bq_rot = _rotate_half_weight_cols(wqT, bq)
    wk_rot, bk_rot = _rotate_half_weight_cols(wkT, params["bk"])

    wqkvT = jnp.concatenate([wqT, wkT, wvT], axis=1)                # (H, 128)
    bqkv = jnp.concatenate([bq, params["bk"], params["bv"]])        # (128,)
    wrotT = jnp.concatenate([wq_rot, wk_rot, jnp.zeros_like(wvT)], axis=1)   # (H, 128)
    brot = jnp.concatenate([bq_rot, bk_rot, jnp.zeros((KV_DIM,), jnp.float32)])

    return {
        "w2T": jnp.concatenate([wqkvT, wrotT], axis=1),             # (H, 256)
        "b2": jnp.concatenate([bqkv, brot]).reshape(1, 2 * QKV_DIM),
        "woT": params["wo"].T,                                      # (H, H)
        "bo": params["bo"].reshape(1, HIDDEN),
    }


# ----------------------------- forward -----------------------------
def qwen2_attention_forward(prep, hidden_states, attention_mask, position_ids,
                            past_kv_values):
    B, S, H = hidden_states.shape
    P = past_kv_values.shape[3]
    T = P + S
    M = B * S
    assert attention_mask.shape == (B, 1, S, T), \
        "expects a head-broadcast additive mask of shape (B, 1, S, T)"

    x2d = hidden_states.reshape(M, H)
    cs = rope_cos_sin_packed(position_ids)                          # (2, M, 128)
    mask3 = attention_mask.reshape(B, S, T)
    # pack past KV as a per-batch lane slab [k_g0|k_g1|v_g0|v_g1] (layout plumbing)
    past_packed = jnp.transpose(past_kv_values, (1, 3, 0, 2, 4)).reshape(B, P, 2 * KV_DIM)

    kernel = functools.partial(_fused_qwen2_attn_kernel, seq=S, past_len=P)

    # TODO(synk): for real Qwen2 sizes, add a KV-tile grid axis (flash-style online
    # softmax) so K/V stream through VMEM (~256-key tiles on v7x, ~512 on v5e/v6e).
    out2d, pres_packed = pl.pallas_call(
        kernel,
        out_shape=(
            jax.ShapeDtypeStruct((M, H), jnp.float32),
            jax.ShapeDtypeStruct((B, T, 2 * KV_DIM), jnp.float32),
        ),
        grid=(B,),
        in_specs=[
            pl.BlockSpec((S, H), lambda b: (b, 0)),                 # x
            pl.BlockSpec((H, 2 * QKV_DIM), lambda b: (0, 0)),       # fused weights
            pl.BlockSpec((1, 2 * QKV_DIM), lambda b: (0, 0)),       # fused bias
            pl.BlockSpec((2, S, QKV_DIM), lambda b: (0, b, 0)),     # packed cos/sin
            pl.BlockSpec((None, S, T), lambda b: (b, 0, 0)),        # mask
            pl.BlockSpec((None, P, 2 * KV_DIM), lambda b: (b, 0, 0)),  # past KV slab
            pl.BlockSpec((H, H), lambda b: (0, 0)),                 # woT
            pl.BlockSpec((1, H), lambda b: (0, 0)),                 # bo
        ],
        out_specs=(
            pl.BlockSpec((S, H), lambda b: (b, 0)),
            pl.BlockSpec((None, T, 2 * KV_DIM), lambda b: (b, 0, 0)),
        ),
        scratch_shapes=[pltpu.VMEM((S, HIDDEN), jnp.float32)],
        compiler_params=pltpu.CompilerParams(
            dimension_semantics=("parallel",)),
    )(x2d, prep["w2T"], prep["b2"], cs, mask3, past_packed, prep["woT"], prep["bo"])

    present = jnp.transpose(
        pres_packed.reshape(B, T, 2, NUM_KV_HEADS, HEAD_DIM), (2, 0, 3, 1, 4))
    return out2d.reshape(B, S, H), present


# ----------------------------- pure-JAX reference (sanity) -----------------------------
def _rotate_half(x):
    x1, x2 = jnp.split(x, 2, axis=-1)
    return jnp.concatenate([-x2, x1], axis=-1)


def _rope_cos_sin_flat(position_ids):
    inv_freq = 1.0 / (ROPE_THETA ** (jnp.arange(0, HEAD_DIM, 2, dtype=jnp.float32)
                                     / HEAD_DIM))
    pos = position_ids.astype(jnp.float32).reshape(-1)
    freqs = pos[:, None] * inv_freq[None, :]
    emb = jnp.concatenate([freqs, freqs], axis=-1)
    return jnp.cos(emb), jnp.sin(emb)


def _reference(params, hidden_states, attention_mask, position_ids, past_kv_values):
    B, S, H = hidden_states.shape
    x2d = hidden_states.reshape(B * S, H)
    q = (x2d @ params["wq"].T + params["bq"]).reshape(B, S, NUM_HEADS, HEAD_DIM).transpose(0, 2, 1, 3)
    k = (x2d @ params["wk"].T + params["bk"]).reshape(B, S, NUM_KV_HEADS, HEAD_DIM).transpose(0, 2, 1, 3)
    v = (x2d @ params["wv"].T + params["bv"]).reshape(B, S, NUM_KV_HEADS, HEAD_DIM).transpose(0, 2, 1, 3)
    cos, sin = _rope_cos_sin_flat(position_ids)
    cos = cos.reshape(B, 1, S, HEAD_DIM)
    sin = sin.reshape(B, 1, S, HEAD_DIM)
    q = q * cos + _rotate_half(q) * sin
    k = k * cos + _rotate_half(k) * sin
    k_full = jnp.concatenate([past_kv_values[0], k], axis=2)
    v_full = jnp.concatenate([past_kv_values[1], v], axis=2)
    k_rep = jnp.repeat(k_full, GROUP, axis=1)
    v_rep = jnp.repeat(v_full, GROUP, axis=1)
    s = jnp.einsum("bhqd,bhkd->bhqk", q, k_rep) / math.sqrt(HEAD_DIM) + attention_mask
    p = jax.nn.softmax(s, axis=-1)
    o = jnp.einsum("bhqk,bhkd->bhqd", p, v_rep).transpose(0, 2, 1, 3).reshape(B * S, H)
    out = (o @ params["wo"].T + params["bo"]).reshape(B, S, H)
    present = jnp.stack([k_full, v_full], axis=0)
    return out, present


# ----------------------------- main -----------------------------
if __name__ == "__main__":
    key = jax.random.PRNGKey(0)
    ks = jax.random.split(key, 10)
    scale = 0.05

    params = {
        "wq": scale * jax.random.normal(ks[0], (HIDDEN, HIDDEN), jnp.float32),
        "bq": scale * jax.random.normal(ks[1], (HIDDEN,), jnp.float32),
        "wk": scale * jax.random.normal(ks[2], (KV_DIM, HIDDEN), jnp.float32),
        "bk": scale * jax.random.normal(ks[3], (KV_DIM,), jnp.float32),
        "wv": scale * jax.random.normal(ks[4], (KV_DIM, HIDDEN), jnp.float32),
        "bv": scale * jax.random.normal(ks[5], (KV_DIM,), jnp.float32),
        "wo": scale * jax.random.normal(ks[6], (HIDDEN, HIDDEN), jnp.float32),
        "bo": jnp.zeros((HIDDEN,), jnp.float32),   # Qwen2 o_proj has no bias
    }
    prep = prepare_params(params)

    hidden_states = jax.random.normal(ks[7], (BATCH, SEQ, HIDDEN), jnp.float32)
    past_kv_values = scale * jax.random.normal(
        ks[8], (2, BATCH, NUM_KV_HEADS, PAST, HEAD_DIM), jnp.float32)
    position_ids = jnp.broadcast_to(PAST + jnp.arange(SEQ, dtype=jnp.int32), (BATCH, SEQ))

    # causal additive mask over the [past | current] key axis
    q_pos = PAST + jnp.arange(SEQ)[:, None]       # (S, 1)
    k_pos = jnp.arange(TOTAL)[None, :]            # (1, T)
    causal = jnp.where(k_pos <= q_pos, 0.0, -1e9).astype(jnp.float32)
    attention_mask = jnp.broadcast_to(causal[None, None], (BATCH, 1, SEQ, TOTAL))

    out, present = qwen2_attention_forward(
        prep, hidden_states, attention_mask, position_ids, past_kv_values)
    out = jax.block_until_ready(out)
    present = jax.block_until_ready(present)

    ref_out, ref_present = _reference(
        params, hidden_states, attention_mask, position_ids, past_kv_values)

    assert out.shape == (BATCH, SEQ, HIDDEN)
    assert present.shape == (2, BATCH, NUM_KV_HEADS, TOTAL, HEAD_DIM)
    assert jnp.allclose(out, ref_out, atol=2e-2, rtol=2e-2)
    assert jnp.allclose(present, ref_present, atol=2e-2, rtol=2e-2)

    print("KERNEL_OK")
</pallas_src>

<mosaic_0001>
module attributes {stable_mosaic.version = 11 : i64} {
  func.func @_fused_qwen2_attn_kernel(%arg0: i32, %arg1: memref<8x64xf32, #tpu.memory_space<vmem>>, %arg2: memref<64x256xf32, #tpu.memory_space<vmem>>, %arg3: memref<1x256xf32, #tpu.memory_space<vmem>>, %arg4: memref<2x8x128xf32, #tpu.memory_space<vmem>>, %arg5: memref<1x8x16xf32, #tpu.memory_space<vmem>>, %arg6: memref<1x8x64xf32, #tpu.memory_space<vmem>>, %arg7: memref<64x64xf32, #tpu.memory_space<vmem>>, %arg8: memref<1x64xf32, #tpu.memory_space<vmem>>, %arg9: memref<8x64xf32, #tpu.memory_space<vmem>>, %arg10: memref<1x16x64xf32, #tpu.memory_space<vmem>>, %arg11: memref<8x64xf32, #tpu.memory_space<vmem>>) attributes {dimension_semantics = [#tpu.dimension_semantics<parallel>], iteration_bounds = array<i64: 2>, scalar_prefetch = 0 : i64, scratch_operands = 1 : i64, tpu.core_type = #tpu.core_type<tc>, window_params = [{transform_indices = @transform_0, window_bounds = array<i64: 8, 64>}, {pipeline_mode = #tpu.pipeline_mode<synchronous>, transform_indices = @transform_1, window_bounds = array<i64: 64, 256>}, {pipeline_mode = #tpu.pipeline_mode<synchronous>, transform_indices = @transform_2, window_bounds = array<i64: 1, 256>}, {transform_indices = @transform_3, window_bounds = array<i64: 2, 8, 128>}, {transform_indices = @transform_4, window_bounds = array<i64: 1, 8, 16>}, {transform_indices = @transform_5, window_bounds = array<i64: 1, 8, 64>}, {pipeline_mode = #tpu.pipeline_mode<synchronous>, transform_indices = @transform_6, window_bounds = array<i64: 64, 64>}, {pipeline_mode = #tpu.pipeline_mode<synchronous>, transform_indices = @transform_7, window_bounds = array<i64: 1, 64>}, {transform_indices = @transform_8, window_bounds = array<i64: 8, 64>}, {transform_indices = @transform_9, window_bounds = array<i64: 1, 16, 64>}]} {
    %c0 = arith.constant 0 : index
    %c0_0 = arith.constant 0 : index
    %0 = vector.load %arg1[%c0, %c0_0] : memref<8x64xf32, #tpu.memory_space<vmem>>, vector<8x64xf32>
    %c0_1 = arith.constant 0 : index
    %c0_2 = arith.constant 0 : index
    %1 = vector.load %arg2[%c0_1, %c0_2] : memref<64x256xf32, #tpu.memory_space<vmem>>, vector<64x256xf32>
    %cst = arith.constant dense<0.000000e+00> : vector<8x256xf32>
    %2 = tpu.matmul %0, %1, %cst {dimension_numbers = #tpu.dot_dimension_numbers<[1], [0], [0], [1], [0, 0, 1, 1], [], []>} : vector<8x64xf32>, vector<64x256xf32>, vector<8x256xf32> -> vector<8x256xf32>
    %c0_3 = arith.constant 0 : index
    %c0_4 = arith.constant 0 : index
    %3 = vector.load %arg3[%c0_3, %c0_4] : memref<1x256xf32, #tpu.memory_space<vmem>>, vector<1x256xf32>
    %4 = vector.broadcast %3 : vector<1x256xf32> to vector<8x256xf32>
    %5 = arith.addf %2, %4 : vector<8x256xf32>
    %6 = vector.extract_strided_slice %5 {offsets = [0, 0], sizes = [8, 128], strides = [1, 1]} : vector<8x256xf32> to vector<8x128xf32>
    %c0_5 = arith.constant 0 : index
    %c0_6 = arith.constant 0 : index
    %c0_7 = arith.constant 0 : index
    %7 = vector.load %arg4[%c0_5, %c0_6, %c0_7] : memref<2x8x128xf32, #tpu.memory_space<vmem>>, vector<1x8x128xf32>
    %8 = vector.shape_cast %7 : vector<1x8x128xf32> to vector<8x128xf32>
    %9 = arith.mulf %6, %8 : vector<8x128xf32>
    %10 = vector.extract_strided_slice %5 {offsets = [0, 128], sizes = [8, 128], strides = [1, 1]} : vector<8x256xf32> to vector<8x128xf32>
    %c1 = arith.constant 1 : index
    %c0_8 = arith.constant 0 : index
    %c0_9 = arith.constant 0 : index
    %11 = vector.load %arg4[%c1, %c0_8, %c0_9] : memref<2x8x128xf32, #tpu.memory_space<vmem>>, vector<1x8x128xf32>
    %12 = vector.shape_cast %11 : vector<1x8x128xf32> to vector<8x128xf32>
    %13 = arith.mulf %10, %12 : vector<8x128xf32>
    %14 = arith.addf %9, %13 : vector<8x128xf32>
    %c0_10 = arith.constant 0 : index
    %c0_11 = arith.constant 0 : index
    %c0_12 = arith.constant 0 : index
    %15 = vector.load %arg6[%c0_10, %c0_11, %c0_12] : memref<1x8x64xf32, #tpu.memory_space<vmem>>, vector<1x8x64xf32>
    %16 = vector.shape_cast %15 : vector<1x8x64xf32> to vector<8x64xf32>
    %c0_13 = arith.constant 0 : index
    %c0_14 = arith.constant 0 : index
    %c0_15 = arith.constant 0 : index
    %17 = vector.load %arg10[%c0_13, %c0_14, %c0_15] : memref<1x16x64xf32, #tpu.memory_space<vmem>>, vector<1x8x64xf32>
    %18 = vector.shape_cast %17 : vector<1x8x64xf32> to vector<8x64xf32>
    %19 = vector.shape_cast %16 : vector<8x64xf32> to vector<1x8x64xf32>
    tpu.vector_store %arg10[%c0_13, %c0_14, %c0_15], %19 {strides = array<i32>} : memref<1x16x64xf32, #tpu.memory_space<vmem>>, vector<1x8x64xf32>,
    %20 = vector.extract_strided_slice %14 {offsets = [0, 64], sizes = [8, 64], strides = [1, 1]} : vector<8x128xf32> to vector<8x64xf32>
    %c0_16 = arith.constant 0 : index
    %c8 = arith.constant 8 : index
    %c0_17 = arith.constant 0 : index
    %21 = vector.load %arg10[%c0_16, %c8, %c0_17] : memref<1x16x64xf32, #tpu.memory_space<vmem>>, vector<1x8x64xf32>
    %22 = vector.shape_cast %21 : vector<1x8x64xf32> to vector<8x64xf32>
    %23 = vector.shape_cast %20 : vector<8x64xf32> to vector<1x8x64xf32>
    tpu.vector_store %arg10[%c0_16, %c8, %c0_17], %23 {strides = array<i32>} : memref<1x16x64xf32, #tpu.memory_space<vmem>>, vector<1x8x64xf32>,
    %c0_18 = arith.constant 0 : index
    %c0_19 = arith.constant 0 : index
    %c0_20 = arith.constant 0 : index
    %24 = vector.load %arg10[%c0_18, %c0_19, %c0_20] : memref<1x16x64xf32, #tpu.memory_space<vmem>>, vector<1x16x64xf32>
    %25 = vector.shape_cast %24 : vector<1x16x64xf32> to vector<16x64xf32>
    %c0_21 = arith.constant 0 : index
    %c0_22 = arith.constant 0 : index
    %c0_23 = arith.constant 0 : index
    %26 = vector.load %arg5[%c0_21, %c0_22, %c0_23] : memref<1x8x16xf32, #tpu.memory_space<vmem>>, vector<1x8x16xf32>
    %27 = vector.shape_cast %26 : vector<1x8x16xf32> to vector<8x16xf32>
    %28 = tpu.concatenate %27, %27 in 0 : vector<8x16xf32>, vector<8x16xf32> -> vector<16x16xf32>
    %29 = vector.extract_strided_slice %25 {offsets = [0, 0], sizes = [16, 16], strides = [1, 1]} : vector<16x64xf32> to vector<16x16xf32>
    %30 = vector.extract_strided_slice %25 {offsets = [0, 32], sizes = [16, 16], strides = [1, 1]} : vector<16x64xf32> to vector<16x16xf32>
    %31 = vector.extract_strided_slice %14 {offsets = [0, 0], sizes = [8, 16], strides = [1, 1]} : vector<8x128xf32> to vector<8x16xf32>
    %32 = vector.extract_strided_slice %14 {offsets = [0, 16], sizes = [8, 16], strides = [1, 1]} : vector<8x128xf32> to vector<8x16xf32>
    %33 = tpu.concatenate %31, %32 in 0 : vector<8x16xf32>, vector<8x16xf32> -> vector<16x16xf32>
    %cst_24 = arith.constant dense<0.000000e+00> : vector<16x16xf32>
    %34 = tpu.matmul %33, %29, %cst_24 {dimension_numbers = #tpu.dot_dimension_numbers<[1], [1], [0], [0], [0, 0, 1, 0], [], []>} : vector<16x16xf32>, vector<16x16xf32>, vector<16x16xf32> -> vector<16x16xf32>
    %35 = arith.addf %34, %28 : vector<16x16xf32>
    %cst_25 = arith.constant dense<0xFF800000> : vector<16xf32>
    %36 = vector.multi_reduction <maximumf>, %35, %cst_25 [1] : vector<16x16xf32> to vector<16xf32>
    %37 = vector.shape_cast %36 : vector<16xf32> to vector<16x1xf32>
    %38 = vector.broadcast %37 : vector<16x1xf32> to vector<16x16xf32>
    %39 = arith.subf %35, %38 : vector<16x16xf32>
    %40 = math.exp %39 : vector<16x16xf32>
    %cst_26 = arith.constant dense<0.000000e+00> : vector<16xf32>
    %41 = vector.multi_reduction <add>, %40, %cst_26 [1] : vector<16x16xf32> to vector<16xf32>
    %42 = vector.shape_cast %41 : vector<16xf32> to vector<16x1xf32>
    %43 = tpu.reciprocal %42 {approx = true} : vector<16x1xf32> -> vector<16x1xf32>
    %44 = vector.broadcast %43 : vector<16x1xf32> to vector<16x16xf32>
    %45 = arith.mulf %40, %44 : vector<16x16xf32>
    %cst_27 = arith.constant dense<0.000000e+00> : vector<16x16xf32>
    %46 = tpu.matmul %45, %30, %cst_27 {dimension_numbers = #tpu.dot_dimension_numbers<[1], [0], [0], [1], [0, 0, 1, 1], [], []>} : vector<16x16xf32>, vector<16x16xf32>, vector<16x16xf32> -> vector<16x16xf32>
    %47 = vector.extract_strided_slice %46 {offsets = [0, 0], sizes = [8, 16], strides = [1, 1]} : vector<16x16xf32> to vector<8x16xf32>
    %c0_28 = arith.constant 0 : index
    %c0_29 = arith.constant 0 : index
    %48 = vector.load %arg11[%c0_28, %c0_29] : memref<8x64xf32, #tpu.memory_space<vmem>>, vector<8x16xf32>
    tpu.vector_store %arg11[%c0_28, %c0_29], %47 {strides = array<i32>} : memref<8x64xf32, #tpu.memory_space<vmem>>, vector<8x16xf32>,
    %49 = vector.extract_strided_slice %46 {offsets = [8, 0], sizes = [8, 16], strides = [1, 1]} : vector<16x16xf32> to vector<8x16xf32>
    %c0_30 = arith.constant 0 : index
    %c16 = arith.constant 16 : index
    %50 = vector.load %arg11[%c0_30, %c16] : memref<8x64xf32, #tpu.memory_space<vmem>>, vector<8x16xf32>
    tpu.vector_store %arg11[%c0_30, %c16], %49 {strides = array<i32>} : memref<8x64xf32, #tpu.memory_space<vmem>>, vector<8x16xf32>,
    %51 = vector.extract_strided_slice %25 {offsets = [0, 16], sizes = [16, 16], strides = [1, 1]} : vector<16x64xf32> to vector<16x16xf32>
    %52 = vector.extract_strided_slice %25 {offsets = [0, 48], sizes = [16, 16], strides = [1, 1]} : vector<16x64xf32> to vector<16x16xf32>
    %53 = vector.extract_strided_slice %14 {offsets = [0, 32], sizes = [8, 16], strides = [1, 1]} : vector<8x128xf32> to vector<8x16xf32>
    %54 = vector.extract_strided_slice %14 {offsets = [0, 48], sizes = [8, 16], strides = [1, 1]} : vector<8x128xf32> to vector<8x16xf32>
    %55 = tpu.concatenate %53, %54 in 0 : vector<8x16xf32>, vector<8x16xf32> -> vector<16x16xf32>
    %cst_31 = arith.constant dense<0.000000e+00> : vector<16x16xf32>
    %56 = tpu.matmul %55, %51, %cst_31 {dimension_numbers = #tpu.dot_dimension_numbers<[1], [1], [0], [0], [0, 0, 1, 0], [], []>} : vector<16x16xf32>, vector<16x16xf32>, vector<16x16xf32> -> vector<16x16xf32>
    %57 = arith.addf %56, %28 : vector<16x16xf32>
    %cst_32 = arith.constant dense<0xFF800000> : vector<16xf32>
    %58 = vector.multi_reduction <maximumf>, %57, %cst_32 [1] : vector<16x16xf32> to vector<16xf32>
    %59 = vector.shape_cast %58 : vector<16xf32> to vector<16x1xf32>
    %60 = vector.broadcast %59 : vector<16x1xf32> to vector<16x16xf32>
    %61 = arith.subf %57, %60 : vector<16x16xf32>
    %62 = math.exp %61 : vector<16x16xf32>
    %cst_33 = arith.constant dense<0.000000e+00> : vector<16xf32>
    %63 = vector.multi_reduction <add>, %62, %cst_33 [1] : vector<16x16xf32> to vector<16xf32>
    %64 = vector.shape_cast %63 : vector<16xf32> to vector<16x1xf32>
    %65 = tpu.reciprocal %64 {approx = true} : vector<16x1xf32> -> vector<16x1xf32>
    %66 = vector.broadcast %65 : vector<16x1xf32> to vector<16x16xf32>
    %67 = arith.mulf %62, %66 : vector<16x16xf32>
    %cst_34 = arith.constant dense<0.000000e+00> : vector<16x16xf32>
    %68 = tpu.matmul %67, %52, %cst_34 {dimension_numbers = #tpu.dot_dimension_numbers<[1], [0], [0], [1], [0, 0, 1, 1], [], []>} : vector<16x16xf32>, vector<16x16xf32>, vector<16x16xf32> -> vector<16x16xf32>
    %69 = vector.extract_strided_slice %68 {offsets = [0, 0], sizes = [8, 16], strides = [1, 1]} : vector<16x16xf32> to vector<8x16xf32>
    %c0_35 = arith.constant 0 : index
    %c32 = arith.constant 32 : index
    %70 = vector.load %arg11[%c0_35, %c32] : memref<8x64xf32, #tpu.memory_space<vmem>>, vector<8x16xf32>
    tpu.vector_store %arg11[%c0_35, %c32], %69 {strides = array<i32>} : memref<8x64xf32, #tpu.memory_space<vmem>>, vector<8x16xf32>,
    %71 = vector.extract_strided_slice %68 {offsets = [8, 0], sizes = [8, 16], strides = [1, 1]} : vector<16x16xf32> to vector<8x16xf32>
    %c0_36 = arith.constant 0 : index
    %c48 = arith.constant 48 : index
    %72 = vector.load %arg11[%c0_36, %c48] : memref<8x64xf32, #tpu.memory_space<vmem>>, vector<8x16xf32>
    tpu.vector_store %arg11[%c0_36, %c48], %71 {strides = array<i32>} : memref<8x64xf32, #tpu.memory_space<vmem>>, vector<8x16xf32>,
    %c0_37 = arith.constant 0 : index
    %c0_38 = arith.constant 0 : index
    %73 = vector.load %arg11[%c0_37, %c0_38] : memref<8x64xf32, #tpu.memory_space<vmem>>, vector<8x64xf32>
    %c0_39 = arith.constant 0 : index
    %c0_40 = arith.constant 0 : index
    %74 = vector.load %arg7[%c0_39, %c0_40] : memref<64x64xf32, #tpu.memory_space<vmem>>, vector<64x64xf32>
    %cst_41 = arith.constant dense<0.000000e+00> : vector<8x64xf32>
    %75 = tpu.matmul %73, %74, %cst_41 {dimension_numbers = #tpu.dot_dimension_numbers<[1], [0], [0], [1], [0, 0, 1, 1], [], []>} : vector<8x64xf32>, vector<64x64xf32>, vector<8x64xf32> -> vector<8x64xf32>
    %c0_42 = arith.constant 0 : index
    %c0_43 = arith.constant 0 : index
    %76 = vector.load %arg8[%c0_42, %c0_43] : memref<1x64xf32, #tpu.memory_space<vmem>>, vector<1x64xf32>
    %77 = vector.broadcast %76 : vector<1x64xf32> to vector<8x64xf32>
    %78 = arith.addf %75, %77 : vector<8x64xf32>
    %c0_44 = arith.constant 0 : index
    %c0_45 = arith.constant 0 : index
    %79 = vector.load %arg9[%c0_44, %c0_45] : memref<8x64xf32, #tpu.memory_space<vmem>>, vector<8x64xf32>
    tpu.vector_store %arg9[%c0_44, %c0_45], %78 {strides = array<i32>} : memref<8x64xf32, #tpu.memory_space<vmem>>, vector<8x64xf32>,
    return
  }
  func.func @transform_0(%arg0: i32) -> (i32, i32) {
    %c0_i32 = arith.constant 0 : i32
    %c0_i32_0 = arith.constant 0 : i32
    return %arg0, %c0_i32 : i32, i32
  }
  func.func @transform_1(%arg0: i32) -> (i32, i32) {
    %c0_i32 = arith.constant 0 : i32
    %c0_i32_0 = arith.constant 0 : i32
    %c0_i32_1 = arith.constant 0 : i32
    return %c0_i32, %c0_i32_0 : i32, i32
  }
  func.func @transform_2(%arg0: i32) -> (i32, i32) {
    %c0_i32 = arith.constant 0 : i32
    %c0_i32_0 = arith.constant 0 : i32
    %c0_i32_1 = arith.constant 0 : i32
    return %c0_i32, %c0_i32_0 : i32, i32
  }
  func.func @transform_3(%arg0: i32) -> (i32, i32, i32) {
    %c0_i32 = arith.constant 0 : i32
    %c0_i32_0 = arith.constant 0 : i32
    %c0_i32_1 = arith.constant 0 : i32
    return %c0_i32, %arg0, %c0_i32_0 : i32, i32, i32
  }
  func.func @transform_4(%arg0: i32) -> (i32, i32, i32) {
    %c0_i32 = arith.constant 0 : i32
    %c0_i32_0 = arith.constant 0 : i32
    %c0_i32_1 = arith.constant 0 : i32
    return %arg0, %c0_i32, %c0_i32_0 : i32, i32, i32
  }
  func.func @transform_5(%arg0: i32) -> (i32, i32, i32) {
    %c0_i32 = arith.constant 0 : i32
    %c0_i32_0 = arith.constant 0 : i32
    %c0_i32_1 = arith.constant 0 : i32
    return %arg0, %c0_i32, %c0_i32_0 : i32, i32, i32
  }
  func.func @transform_6(%arg0: i32) -> (i32, i32) {
    %c0_i32 = arith.constant 0 : i32
    %c0_i32_0 = arith.constant 0 : i32
    %c0_i32_1 = arith.constant 0 : i32
    return %c0_i32, %c0_i32_0 : i32, i32
  }
  func.func @transform_7(%arg0: i32) -> (i32, i32) {
    %c0_i32 = arith.constant 0 : i32
    %c0_i32_0 = arith.constant 0 : i32
    %c0_i32_1 = arith.constant 0 : i32
    return %c0_i32, %c0_i32_0 : i32, i32
  }
  func.func @transform_8(%arg0: i32) -> (i32, i32) {
    %c0_i32 = arith.constant 0 : i32
    %c0_i32_0 = arith.constant 0 : i32
    return %arg0, %c0_i32 : i32, i32
  }
  func.func @transform_9(%arg0: i32) -> (i32, i32, i32) {
    %c0_i32 = arith.constant 0 : i32
    %c0_i32_0 = arith.constant 0 : i32
    %c0_i32_1 = arith.constant 0 : i32
    return %arg0, %c0_i32, %c0_i32_0 : i32, i32, i32
  }
}

</mosaic_0001>

<bundles_post_ra>
// kernel: tpu_custom_call.1
= control target key start
LH: loop header
LB: loop body
LE: loop exit
PB: predicated region body
PF: predicated region fallthrough
CT: control target
= control target key end

     0   :  { %s2365_s0 = inlined_call_operand.hbm [shape: f32[16,64], index: 0, kind: input, shape index: {}]   ;;  %s2366_s1 = inlined_call_operand.hbm [shape: f32[64,256], index: 1, kind: input, shape index: {}]   ;;  %s2367_s2 = inlined_call_operand.vmem [shape: f32[1,256], index: 2, kind: input, shape index: {}]   ;;  %s2368_s3 = inlined_call_operand.hbm [shape: f32[2,16,128], index: 3, kind: input, shape index: {}]   ;;  %s2369_s4 = inlined_call_operand.hbm [shape: f32[2,8,16], index: 4, kind: input, shape index: {}]   ;;  %s2370_s5 = inlined_call_operand.vmem [shape: f32[2,8,64], index: 5, kind: input, shape index: {}]   ;;  %s2371_s6 = inlined_call_operand.hbm [shape: f32[64,64], index: 6, kind: input, shape index: {}]   ;;  %s2372_s7 = inlined_call_operand.vmem [shape: f32[1,64], index: 7, kind: input, shape index: {}]   ;;  %s2373_s8 = inlined_call_operand.hbm [shape: f32[16,64], index: 8, kind: output, shape index: {0}]   ;;  %s2374_s9 = inlined_call_operand.hbm [shape: f32[2,16,64], index: 9, kind: output, shape index: {1}]  }
   0x1   :  { %2390 = sst [smem:[#allocation26_spill]] %s2365_s0 }
   0x2   :  { %2391 = sst [smem:[#allocation27_spill]] %s2368_s3 }
   0x3   :  { %2392 = sst [smem:[#allocation28_spill]] %s2372_s7 }
   0x4   :  { %2393 = sst [smem:[#allocation29_spill]] %s2373_s8 }
   0x5   :  { %15 = vsyncpa [#allocation4], 0 }
   0x6   :  { %17 = vsyncpa [#allocation4 + $0x1], 0 }
   0x7   :  { %18 = vsyncpa [#allocation7], 0 }
   0x8   :  { %19 = vsyncpa [#allocation5], 0 }
   0x9   :  { %21 = vsyncpa [#allocation5 + $0x1], 0 }
   0xa   :  { %22 = vsyncpa [#allocation13], 0 }
   0xb   :  { %24 = vsyncpa [#allocation13 + $0x1], 0  ;;  %s1933_s30 = smov 0   ;;  %s1935_s10 = smov 0  }
   0xc   :  { %s1937_s11 = smov 0   ;;  %s1939_s12 = smov 0  }
   0xd LB: > { %2394 = sst [smem:[#allocation20_spill]] %s1846_s30  ;;  %s1954_s13 = sadd.s32 1, %s1858_s12   ;;  %s1858_s12 = sphi %s1939_s12, %s2430_s12   ;;  %s1854_s11 = sphi %s1937_s11, %s2432_s11   ;;  %s1850_s10 = sphi %s1935_s10, %s2434_s10   ;;  %s1846_s30 = sphi %s1933_s30, %s2433_s30  }
   0xe   : > { %2395 = sst [smem:[#allocation21_spill]] %s1854_s11  ;;  %s37_s14 = sadd.s32 1, %s1854_s11 }
   0xf   : > { %2396 = sst [smem:[#allocation22_spill]] %s1858_s12  ;;  %s34_s15 = ssub.s32 %s1858_s12, %s1954_s13 }
  0x10   : > { %2397 = sst [smem:[#allocation23_spill]] %s1954_s13  ;;  %p2375_p0 = scmp.ne.s32.totalorder %s1854_s11, %s1850_s10 }
  0x11   : > { %p35_p1 = scmp.eq.s32.totalorder %s34_s15, 0  ;;  %p45_p2 = scmp.eq.s32.totalorder %s1858_s12, 0 }
  0x12   : > { %p1517_p4 = scmp.lt.s32.totalorder %s1858_s12, 2  ;;  %s320_s17 = sand.u32 1, %s1858_s12  }
  0x13   : > { %s1965_s16 = scalar_select %p35_p1, %s1854_s11, %s37_s14  }
  0x14   : > { %p46_p5 = por %p45_p2, %p2375_p0  ;;  %s322_s18 = sand.u32 1, %s1854_s11  }
  0x15   : > { %2398 = sst [smem:[#allocation24_spill]] %s1965_s16  ;;  %s1972_s19 = sshll.u32 %s322_s18, 3 }
  0x16   : > { %s1975_s20 = sshll.u32 %s1858_s12, 7  ;;  %s2399_s0 = sld [smem:[#allocation26_spill]] }
  0x17   : > { %s324_s24 = scalar_lea.vmem [#allocation3], %s1972_s19  ;;  %p1984_p6 = pnand %p1517_p4, %p46_p5 }
  0x18   : > { %s331_s25 = sshll.u32 %s324_s24, 4  ;;  %s1990_s27 = sshll.u32 %s322_s18, 4  ;;  %s1988_s25 = int_to_ptr.vmem [resolvable:$true] %s331_s25 }
  0x19   : > { %s2400_s26 = scalar_select %p1984_p6, 1, 0 }
  0x1a   : > { %s1992_s28 = scalar_lea.sflag [#allocation4], %s320_s17  ;;  %p1998_p8 = pneg %p1984_p6 }
  0x1c   : > { %s1981_s23 = scalar_lea.hbm %s2399_s0, %s1975_s20  ;;  %s1607_s22 = scalar_lea.hbm %s2399_s0, 256 }
  0x1d   : > { %s1602_s29 = scalar_lea.hbm %s1981_s23, 128  ;;  %p1608_p11 = scmp.lt.u32.totalorder %s1981_s23, %s2399_s0 }
  0x1e   : > { %p1603_p7 = scmp.ne.s32.totalorder %s1981_s23, %s1602_s29  ;;  %p1609_p12 = scmp.lt.u32.totalorder %s1607_s22, %s1602_s29 }
  0x1f   : > { %p1611_p1 = scmp.lt.u32.totalorder %s1602_s29, %s1981_s23 }
  0x20   : > { %p1605_p9 = pnand %p1998_p8, %p1603_p7  ;;  %p1610_p13 = por %p1609_p12, %p1608_p11 }
  0x22   : > { %p1606_p10 = pneg %p1605_p9  ;;  %p1612_p2 = por %p1611_p1, %p1610_p13 }
  0x24   : > { %p1613_p4 = pnand %p1612_p2, %p1606_p10 }
  0x26   : > { %1616 = shalt.err (!%p1613_p4)
}
  0x27   : > { %s1617_s17 = scalar_lea.vmem %s1988_s25, 128  ;;  %s1860_s15 = smov [#allocation3]  }
  0x28   : > { %p1618_p5 = scmp.ne.s32.totalorder %s1988_s25, %s1617_s17  ;;  %s1622_s21 = sshll.u32 %s1860_s15, 4  ;;  %s1623_s21 = int_to_ptr.vmem [resolvable:$false] %s1622_s21 }
  0x29   : > { %s1624_s24 = scalar_lea.vmem %s1623_s21, 256  ;;  %p1625_p3 = scmp.lt.s32.totalorder %s1988_s25, %s1623_s21 }
  0x2a   : > { %p1620_p7 = pnand %p1618_p5, %p1998_p8  ;;  %p1626_p0 = scmp.lt.s32.totalorder %s1624_s24, %s1617_s17 }
  0x2c   : > { %p1621_p9 = pneg %p1620_p7  ;;  %p1627_p11 = por %p1626_p0, %p1625_p3 }
  0x2e   : > { %p1628_p12 = pnand %p1627_p11, %p1621_p9 }
  0x30   : > { %1631 = shalt.err (!%p1628_p12)
}
  0x31   : > { %1501 = dma.hbm_to_vmem [thread:$0]  (!%p1984_p6), %s1981_s23, 128, %s1988_s25, %s1992_s28  }
  0x32   : > { %s2402_s3 = sld [smem:[#allocation27_spill]]  ;;  %s342_s17 = scalar_lea.vmem [#allocation8], %s1990_s27 }
  0x33   : > { %s348_s15 = sshll.u32 %s342_s17, 4  ;;  %s2032_s21 = sadd.s32 4294967295, %s1858_s12   ;;  %s2029_s15 = int_to_ptr.vmem [resolvable:$true] %s348_s15 }
  0x34   : > { %s1309_s24 = sadd.s32 4294967294, %s1858_s12   ;;  %p50_p0 = scmp.ne.s32.totalorder %s1850_s10, %s1846_s30 }
  0x35   : > { %p2382_p3 = scmp.eq.s32.totalorder %s2032_s21, 0  ;;  %p236_p10 = scmp.eq.s32.totalorder %s2032_s21, 1 }
  0x36   : > { %p242_p13 = scmp.eq.s32.totalorder %s1309_s24, 1  ;;  %p1310_p2 = scmp.ge.s32.totalorder %s1858_s12, 1 }
  0x37   : > { %p2041_p1 = por %p2382_p3, %p50_p0  ;;  %p2404_p4 = scmp.ne.s32.totalorder %s1854_s11, %s1850_s10 }
  0x38   : > { %s2026_s18 = scalar_lea.hbm %s2402_s3, %s1975_s20  ;;  %p2053_p7 = por %p242_p13, %p50_p0 }
  0x39   : > { %s2403_s23 = scalar_select %p2041_p1, 1, 0 }
  0x3a   : > { %p2049_p5 = por %p236_p10, %p2404_p4  ;;  %p275_p9 = scmp.lt.s32.totalorder %s1858_s12, 3 }
  0x3b   : > { %s2406_s27 = scalar_select %p2053_p7, 1, 0 }
  0x3c   : > { %s2405_s25 = scalar_select %p2049_p5, 1, 0 }
  0x3d   : > { %2407 = sst [smem:[#allocation25_spill]] %s2406_s27  ;;  %p2058_p11 = pnand %p1310_p2, %p275_p9 }
  0x3e   : > { %s1861_s22 = smov [#allocation6]   ;;  %s1862_s0 = smov [#allocation10]  }
  0x3f   : > { %s2408_s29 = scalar_select %p2058_p11, 1, 0 }
  0x40   : > { %s287_s17 = sshll.u32 %s1861_s22, 4  ;;  %p1491_p12 = pneg %p2058_p11  ;;  %s2062_s17 = int_to_ptr.vmem [resolvable:$true] %s287_s17 }
  0x41   : > { %s2072_s16 = sshll.u32 %s1862_s0, 4  ;;  %s1632_s11 = scalar_lea.hbm %s2026_s18, 256  ;;  %s2099_s16 = int_to_ptr.vmem [resolvable:$true] %s2072_s16 }
  0x42   : > { %p2068_p10 = pnand %p1491_p12, %p2382_p3  ;;  %p1633_p0 = scmp.ne.s32.totalorder %s2026_s18, %s1632_s11 }
  0x43   : > { %s1637_s22 = scalar_lea.hbm %s2402_s3, 512  ;;  %p1638_p4 = scmp.lt.u32.totalorder %s2026_s18, %s2402_s3 }
  0x44   : > { %s2409_s24 = scalar_select %p2068_p10, 1, 0 }
  0x45   : > { %p1635_p13 = pnand %p1633_p0, %p1998_p8  ;;  %p1639_p9 = scmp.lt.u32.totalorder %s1637_s22, %s1632_s11 }
  0x46   : > { %p1641_p3 = scmp.lt.u32.totalorder %s1632_s11, %s2026_s18 }
  0x47   : > { %p1636_p2 = pneg %p1635_p13  ;;  %p1640_p12 = por %p1639_p9, %p1638_p4 }
  0x49   : > { %p1642_p7 = por %p1641_p3, %p1640_p12 }
  0x4b   : > { %p1643_p5 = pnand %p1642_p7, %p1636_p2 }
  0x4d   : > { %1646 = shalt.err (!%p1643_p5)
}
  0x4e   : > { %s1647_s0 = scalar_lea.vmem %s2029_s15, 256  ;;  %s1863_s12 = smov [#allocation8]  }
  0x4f   : > { %p1648_p0 = scmp.ne.s32.totalorder %s2029_s15, %s1647_s0  ;;  %s1652_s13 = sshll.u32 %s1863_s12, 4  ;;  %s1653_s13 = int_to_ptr.vmem [resolvable:$false] %s1652_s13 }
  0x50   : > { %s1654_s30 = scalar_lea.vmem %s1653_s13, 512  ;;  %p1655_p11 = scmp.lt.s32.totalorder %s2029_s15, %s1653_s13 }
  0x51   : > { %p1650_p13 = pnand %p1648_p0, %p1998_p8  ;;  %p1656_p10 = scmp.lt.s32.totalorder %s1654_s30, %s1647_s0 }
  0x53   : > { %p1651_p1 = pneg %p1650_p13  ;;  %p1657_p4 = por %p1656_p10, %p1655_p11 }
  0x55   : > { %p1658_p9 = pnand %p1657_p4, %p1651_p1 }
  0x57   : > { %1661 = shalt.err (!%p1658_p9)
}
  0x58   : > { %s1864_s11 = smov 256   ;;  %s2388_s27 = smov 128  }
  0x59   : > { %s1866_s22 = smov 8   ;;  %s1662_s13 = scalar_lea.hbm %s2366_s1, 2048 }
  0x5a   : > { %1504 = dma.hbm_to_vmem [thread:$0]  (!%p1984_p6), %s2026_s18, 256, %s2029_s15, %s1992_s28, %s1864_s11, %s2388_s27, %s1866_s22  }
  0x5b   : > { %p1663_p3 = scmp.ne.s32.totalorder %s2366_s1, %s1662_s13  ;;  %p2410_p1 = scmp.ne.s32.totalorder %s2409_s24, 0 }
  0x5c   : > { %p1669_p10 = scmp.lt.u32.totalorder %s1662_s13, %s2366_s1 }
  0x5d   : > { %p1664_p5 = pneg %p2410_p1 }
  0x5f   : > { %p1665_p7 = pnand %p1664_p5, %p1663_p3 }
  0x61   : > { %p1666_p11 = pneg %p1665_p7 }
  0x63   : > { %p1671_p2 = pnand %p1669_p10, %p1666_p11 }
  0x65   : > { %1674 = shalt.err (!%p1671_p2)
}
  0x66   : > { %s1675_s18 = scalar_lea.vmem %s2062_s17, 2048  ;;  %p1683_p4 = scmp.lt.s32.totalorder %s2062_s17, %s2062_s17 }
  0x67   : > { %p1676_p12 = scmp.ne.s32.totalorder %s2062_s17, %s1675_s18  ;;  %p1684_p9 = scmp.lt.s32.totalorder %s1675_s18, %s1675_s18 }
  0x69   : > { %p1678_p0 = pnand %p1676_p12, %p1664_p5  ;;  %p1685_p3 = por %p1684_p9, %p1683_p4 }
  0x6b   : > { %p1679_p13 = pneg %p1678_p0 }
  0x6d   : > { %p1686_p7 = pnand %p1685_p3, %p1679_p13 }
  0x6f   : > { %1689 = shalt.err (!%p1686_p7)
}
  0x70   : > { %s1867_s3 = smov 16   ;;  %s1690_s12 = scalar_lea.hbm %s2371_s6, 1024 }
  0x71   : > { %1494 = dma.hbm_to_vmem [thread:$0]  (!%p2410_p1), %s2366_s1, 2048, %s2062_s17, [#allocation7], %s1864_s11, %s1864_s11, %s1867_s3  }
  0x72   : > { %p1691_p11 = scmp.ne.s32.totalorder %s2371_s6, %s1690_s12  ;;  %p1697_p12 = scmp.lt.u32.totalorder %s1690_s12, %s2371_s6 }
  0x74   : > { %p1693_p10 = pnand %p1691_p11, %p1664_p5 }
  0x76   : > { %p1694_p2 = pneg %p1693_p10 }
  0x78   : > { %p1699_p0 = pnand %p1697_p12, %p1694_p2 }
  0x7a   : > { %1702 = shalt.err (!%p1699_p0)
}
  0x7b   : > { %s1703_s17 = scalar_lea.vmem %s2099_s16, 1024  ;;  %p1711_p3 = scmp.lt.s32.totalorder %s2099_s16, %s2099_s16 }
  0x7c   : > { %p1704_p13 = scmp.ne.s32.totalorder %s2099_s16, %s1703_s17  ;;  %p1712_p7 = scmp.lt.s32.totalorder %s1703_s17, %s1703_s17 }
  0x7e   : > { %p1706_p4 = pnand %p1704_p13, %p1664_p5  ;;  %p1713_p11 = por %p1712_p7, %p1711_p3 }
  0x80   : > { %p1707_p9 = pneg %p1706_p4 }
  0x82   : > { %p1714_p10 = pnand %p1713_p11, %p1707_p9 }
  0x84   : > { %1717 = shalt.err (!%p1714_p10)
}
  0x85   : > { %s2411_s11 = smov 128   ;;  %s2160_s15 = scalar_lea.hbm %s2369_s4, %s1975_s20 }
  0x86   : > { %1497 = dma.hbm_to_vmem [thread:$0]  (!%p2410_p1), %s2371_s6, 1024, %s2099_s16, [#allocation7], %s2411_s11, %s2411_s11, %s1866_s22  }
  0x87   : > { %s362_s24 = scalar_lea.vmem [#allocation9], %s1972_s19  ;;  %s1718_s12 = scalar_lea.hbm %s2160_s15, 128 }
  0x88   : > { %s369_s0 = sshll.u32 %s362_s24, 4  ;;  %p1719_p5 = scmp.ne.s32.totalorder %s2160_s15, %s1718_s12  ;;  %s370_s0 = int_to_ptr.vmem [resolvable:$true] %s369_s0 }
  0x89   : > { %s1723_s16 = scalar_lea.hbm %s2369_s4, 256  ;;  %p1724_p1 = scmp.lt.u32.totalorder %s2160_s15, %s2369_s4 }
  0x8a   : > { %p1721_p2 = pnand %p1719_p5, %p1998_p8  ;;  %p1725_p0 = scmp.lt.u32.totalorder %s1723_s16, %s1718_s12 }
  0x8b   : > { %p1727_p4 = scmp.lt.u32.totalorder %s1718_s12, %s2160_s15 }
  0x8c   : > { %p1722_p12 = pneg %p1721_p2  ;;  %p1726_p13 = por %p1725_p0, %p1724_p1 }
  0x8e   : > { %p1728_p9 = por %p1727_p4, %p1726_p13 }
  0x90   : > { %p1729_p3 = pnand %p1728_p9, %p1722_p12 }
  0x92   : > { %1732 = shalt.err (!%p1729_p3)
}
  0x93   : > { %s1733_s19 = scalar_lea.vmem %s370_s0, 128  ;;  %s1868_s20 = smov [#allocation9]  }
  0x94   : > { %p1734_p7 = scmp.ne.s32.totalorder %s370_s0, %s1733_s19  ;;  %s1738_s17 = sshll.u32 %s1868_s20, 4  ;;  %s1739_s17 = int_to_ptr.vmem [resolvable:$false] %s1738_s17 }
  0x95   : > { %s1740_s11 = scalar_lea.vmem %s1739_s17, 256  ;;  %p1741_p5 = scmp.lt.s32.totalorder %s370_s0, %s1739_s17 }
  0x96   : > { %p1736_p11 = pnand %p1734_p7, %p1998_p8  ;;  %p1742_p2 = scmp.lt.s32.totalorder %s1740_s11, %s1733_s19 }
  0x98   : > { %p1737_p10 = pneg %p1736_p11  ;;  %p1743_p6 = por %p1742_p2, %p1741_p5 }
  0x9a   : > { %p1744_p0 = pnand %p1743_p6, %p1737_p10 }
  0x9c   : > { %1747 = shalt.err (!%p1744_p0)
}
  0x9d   : > { %p2412_p1 = scmp.ne.s32.totalorder %s2400_s26, 0  ;;  %p2413_p12 = scmp.ne.s32.totalorder %s2408_s29, 0 }
  0x9e   : > { %s387_s14 = sand.u32 (!%p2413_p12), 1, %s2032_s21   ;;  %s2185_s27 = sand.u32 (!%p2413_p12), 1, %s1850_s10  }
  0x9f   : > { %1507 = dma.hbm_to_vmem [thread:$0]  (!%p2412_p1), %s2160_s15, 128, %s370_s0, %s1992_s28  }
  0xa0   : > { %385 = sbr.rel (%p2413_p12) target bundleno = 2191 (0x88f), region = 52  ;;  %s2188_s3 = sshll.u32 (!%p2413_p12), %s2185_s27, 3 }
  0xa1   : > { %s388_s7 = scalar_lea.sflag (!%p2413_p12), [#allocation4], %s387_s14  ;;  %s391_s8 = scalar_lea.vmem (!%p2413_p12), [#allocation3], %s2188_s3 }
  0xa2   : > { %p2414_p6 = scmp.ne.s32.totalorder (!%p2413_p12), %s2403_s23, 0 }
  0xa7   : > { %1821 = dma.done.wait (%p2414_p6), %s388_s7, 128  }
  0xa8   : > { %1823 = vsyncadd (%p2414_p6), %s388_s7, 4294967168  ;;  %p2415_p8 = scmp.eq.s32.totalorder %s2032_s21, 0 }
  0xaa   : > { %1825 = dma.done.wait (%p2415_p8), [#allocation7], 2048   ;;  %p2416_p13 = pmov %p2415_p8 }
  0xab   : > { %s1323_s26 = sshll.u32 %s2185_s27, 4 }
  0xac   : > { %1827 = vsyncadd (%p2416_p13), [#allocation7], 4294965248  ;;  %s2202_s28 = scalar_lea.vmem [#allocation8], %s1323_s26 }
  0xad   : > { %1829 = dma.done.wait (%p2414_p6), %s388_s7, 384  }
  0xae   : > { %1831 = vsyncadd (%p2414_p6), %s388_s7, 4294966912  ;;  %s413_s29 = scalar_lea.vmem [#allocation9], %s2188_s3  ;;  %p2417_p4 = pmov %p2415_p8 }
  0xb0   : > { %1833 = dma.done.wait (%p2417_p4), [#allocation7], 1024   ;;  %p2418_p9 = pmov %p2417_p4 }
  0xb1   : > { %v1869_v0 = vmov 0.0   ;;  %v477_v1 = vld [vmem:[#allocation6 + $0x8] sm:$0xff]  ;;  %v479_v2 = vld [vmem:[#allocation6 + $0x18] sm:$0xff]  ;;  %v476_v3 = vld [vmem:[#allocation6] sm:$0xff]  ;;  %vm504_vm0 = vcmask 523264   ;;  %p471_p3 = scmp.lt.s32.totalorder %s2032_s21, 1  ;;  %v494_v27 = vlaneseq }
  0xb2   : > { %1835 = vsyncadd (%p2418_p9), [#allocation7], 4294966272  ;;  %572 = vmatprep.mubr.f32.mxu0 %v1869_v0  ;;  %v1425_v4 = vpack.c.bf16 %v479_v2, %v477_v1  ;;  %v478_v5 = vld [vmem:[#allocation6 + $0x10] sm:$0xff]  ;;  %v481_v6 = vld [vmem:[#allocation6 + $0x28] sm:$0xff]  ;;  %s2224_s13 = scalar_lea.vmem [#allocation12], %s1323_s26  ;;  %vm597_vm1 = vcmask 130048  }
  0xb3   : > { %v483_v7 = vld [vmem:[#allocation6 + $0x38] sm:$0xff]  ;;  %v1427_v8 = vpack.c.bf16 %v478_v5, %v476_v3  ;;  %v480_v10 = vld [vmem:[#allocation6 + $0x20] sm:$0xff]  ;;  %v482_v11 = vld [vmem:[#allocation6 + $0x30] sm:$0xff]  ;;  %s472_s23 = scalar_select %p471_p3, %s2032_s21, 1  ;;  %v495_v28 = vshrl.u32 %v494_v27, 7  ;;  %vm797_vm3 = vcmask 261248  }
  0xb4   : > { %v1429_v9 = vpack.c.bf16 %v483_v7, %v481_v6  ;;  %v485_v12 = vld [vmem:[#allocation6 + $0x48] sm:$0xff]  ;;  %1426 = vmatprep.subr.bf16.mxu0 %v1425_v4  ;;  %v487_v13 = vld [vmem:[#allocation6 + $0x58] sm:$0xff]  ;;  %v1431_v14 = vpack.c.bf16 %v482_v11, %v480_v10  ;;  %v484_v16 = vld [vmem:[#allocation6 + $0x40] sm:$0xff]  ;;  %s1870_s22 = smov 64   ;;  %s1871_s18 = smov 112   ;;  %vm1876_vm4 = vmmov 0  }
  0xb5   : > { %1428 = vmatpush1.bf16.msra.mxu0 %v1427_v8  ;;  %v1433_v15 = vpack.c.bf16 %v487_v13, %v485_v12  ;;  %v486_v17 = vld [vmem:[#allocation6 + $0x50] sm:$0xff]  ;;  %v489_v18 = vld [vmem:[#allocation6 + $0x68] sm:$0xff]  ;;  %v491_v19 = vld [vmem:[#allocation6 + $0x78] sm:$0xff]  ;;  %s1328_s15 = sshll.u32 %s472_s23, 3  ;;  %v496_v29 = vsub.s32 0, %v495_v28  ;;  %v500_v31 = vsub.s32 1, %v495_v28 }
  0xb6   : > { %1430 = vmatprep.subr.bf16.mxu0 %v1429_v9  ;;  %v1435_v20 = vpack.c.bf16 %v486_v17, %v484_v16  ;;  %v1437_v21 = vpack.c.bf16 %v491_v19, %v489_v18  ;;  %v488_v22 = vld [vmem:[#allocation6 + $0x60] sm:$0xff]  ;;  %v490_v23 = vld [vmem:[#allocation6 + $0x70] sm:$0xff]  ;;  %s474_s12 = scalar_lea.vmem %s2370_s5, %s1328_s15  ;;  %v492_v30 = vld [vmem:[%s2367_s2] sm:$0x3]  ;;  %s1872_s19 = smov 96   ;;  %vm1003_vm5 = vcmask 392448  }
  0xb7   : > { %v1439_v24 = vpack.c.bf16 %v490_v23, %v488_v22  ;;  %v475_v25 = vld [vmem:[%s391_s8] sm:$0xff]  ;;  %v585_v26 = vld [vmem:[%s474_s12] sm:$0xff]  ;;  %v497_v32 = vrot.slane %v492_v30, %v496_v29  ;;  %v501_v33 = vrot.slane %v492_v30, %v500_v31  ;;  %v579_v35 = vld [vmem:[%s2202_s28] sm:$0xff]  ;;  %s1873_s20 = smov 80   ;;  %s1874_s17 = smov 16   ;;  %vm1009_vm6 = vcmask 523648  }
  0xb8   : > { %586 = vst.msk [vmem:[%s2224_s13] sm:$0xff] %vm504_vm0, %v585_v26  ;;  %v1330_v38 = vld [vmem:[%s2202_s28 + $0x8] sm:$0xff]  ;;  %vm2241_vm2 = vmpackc.low %vm597_vm1, %vm597_vm1  ;;  %v594_v50 = vld [vmem:[%s413_s29] sm:$0xff]  ;;  %s1877_s11 = smov 48   ;;  %s1878_s14 = smov 32  }
  0xb9   : > { %1432 = vmatpush1.bf16.msra.mxu0 %v1431_v14  ;;  %s1352_s7 = sshll.u32 %s2032_s21, 8  ;;  %s1133_s8 = sshll.u32 %s2224_s13, 4  ;;  %s2286_s8 = int_to_ptr.vmem [resolvable:$true] %s1133_s8 }
  0xba   : > { %1434 = vmatprep.subr.bf16.mxu0 %v1433_v15  ;;  %s2284_s29 = scalar_lea.hbm %s2374_s9, %s1352_s7  ;;  %s1107_s23 = scalar_lea.sflag [#allocation13], %s2185_s27 }
  0xbb   : > { %s1748_s15 = scalar_lea.vmem %s2286_s8, 256  ;;  %p2421_p11 = scmp.ne.s32.totalorder %s2405_s25, 0 }
  0xbc   : > { %p1749_p7 = scmp.ne.s32.totalorder %s2286_s8, %s1748_s15  ;;  %s1879_s24 = smov [#allocation12]  }
  0xbd   : > { %1436 = vmatpush1.bf16.msra.mxu0 %v1435_v20  ;;  %s1752_s0 = sshll.u32 %s1879_s24, 4  ;;  %s1753_s0 = int_to_ptr.vmem [resolvable:$false] %s1752_s0 }
  0xbe   : > { %1438 = vmatprep.subr.bf16.mxu0 %v1437_v21  ;;  %p1750_p10 = pnand %p1749_p7, %p2421_p11  ;;  %s1754_s12 = scalar_lea.vmem %s1753_s0, 512 }
  0xbf   : > { %v592_v44 = vld [vmem:[%s2224_s13] sm:$0xff]  ;;  %p1755_p2 = scmp.lt.s32.totalorder %s2286_s8, %s1753_s0  ;;  %p1756_p0 = scmp.lt.s32.totalorder %s1754_s12, %s1748_s15 }
  0xc0   : > { %p1751_p5 = pneg %p1750_p10 }
  0xc1   : > { %1440 = vmatpush1.bf16.msra.mxu0 %v1439_v24  ;;  %p1757_p1 = por %p1756_p0, %p1755_p2 }
  0xc3   : > { %p1758_p12 = pnand %p1757_p1, %p1751_p5 }
  0xc4   : > { %1329 = vmatmul.mubr.msk.f32.vlgmr.msra.gmra.mrb[0].mxu0 %vm504_vm0, %v475_v25 }
  0xc5   : > { %1422 = vmatprep.mubr.msk.f32.mxu0 %vm1876_vm4, %v1869_v0 }
 0x197   : > { %v574_v34 = vpop.f32.mrb[0].mxu0 }
 0x198   : > { %v575_v36 = vadd.f32 %v574_v34, %v497_v32  ;;  %v576_v37 = vpop.f32.mrb[1].mxu0 }
 0x199   : > { %v577_v39 = vadd.f32 %v576_v37, %v501_v33 }
 0x19a   : > { %v580_v40 = vmul.f32 %v579_v35, %v575_v36 }
 0x19b   : > { %v583_v41 = vmul.f32 %v1330_v38, %v577_v39 }
 0x19d   : > { %v584_v42 = vadd.f32 %v583_v41, %v580_v40 }
 0x19f   : > { %588 = vrot.lane.b32.xlu0 %v584_v42, %s1870_s22  ;;  %1382 = vmatprep.mubr.msk.f32.mxu1 %vm597_vm1, %v584_v42 }
 0x1a3   : > { %595 = vrot.lane.b32.xlu0 %v584_v42, %s1871_s18 }
 0x211   : > { %v589_v43 = vpop.permute.xlu0 %588 }
 0x212   : > { %591 = vst.msk [vmem:[%s2224_s13 + $0x8] sm:$0xff] %vm504_vm0, %v589_v43 }
 0x215   : > { %v596_v49 = vpop.permute.xlu0 %595 }
 0x219   : > { %v593_v45 = vld [vmem:[%s2224_s13 + $0x8] sm:$0xff] }
 0x21a   : > { %v1441_v47 = vpack.c.bf16 %v593_v45, %v592_v44  ;;  %v2245_v48 = vpack.i.bf16 %v593_v45, %v592_v44 }
 0x21c   : > { %1443 = vmatprep.subr.msk.bf16.mxu1 %vm2241_vm2, %v1441_v47 }
 0x21d   : > { %1446 = vmatpush3.bf16.xpose.msk.msra.mxu1 %vm2241_vm2, %v1441_v47 }
 0x224   : > { %1383 = vmatmul.mubr.msk.f32.vlgmr.msra.gmra.mrb[0].mxu1 %vm597_vm1, %v596_v49 }
 0x2f7   : > { %v1384_v51 = vpop.f32.mrb[0].mxu1 }
 0x2f8   : > { %v674_v52 = vpop.f32.mrb[1].mxu1  ;;  %v680_v54 = vadd.f32 %v1384_v51, %v594_v50  ;;  %v1014_v51 = vld [vmem:[#allocation10 + $0x10] sm:$0xff] }
 0x2f9   : > { %v675_v53 = vadd.f32 %v674_v52, %v594_v50  ;;  %v1875_v52 = vmov 0.0|0.0  }
 0x2fa   : > { %v686_v56 = vsel %vm597_vm1, %v680_v54, -inf  ;;  %1461 = vmatprep.subr.bf16.mxu0 %v1875_v52 }
 0x2fb   : > { %v683_v55 = vsel %vm597_vm1, %v675_v53, -inf }
 0x2fc   : > { %684 = vmax.xlane.f32.xlu1 %v683_v55 }
 0x300   : > { %687 = vmax.xlane.f32.xlu1 %v686_v56  ;;  %v1016_v56 = vld [vmem:[#allocation10 + $0x20] sm:$0xff] }
 0x389   : > { %v685_v57 = vpop.xlane.xlu1 %684 }
 0x38a   : > { %v689_v58 = vsub.f32 %v675_v53, %v685_v57  ;;  %v1017_v57 = vld [vmem:[#allocation10 + $0x28] sm:$0xff] }
 0x38c   : > { %v691_v59 = vmul.f32 1.442695, %v689_v58  ;;  %v1468_v58 = vpack.c.bf16 %v1017_v57, %v1016_v56 }
 0x38d   : > { %v688_v60 = vpop.xlane.xlu1 %687 }
 0x38e   : > { %1586 = vpow2.f32 %v691_v59  ;;  %v690_v61 = vsub.f32 %v680_v54, %v688_v60  ;;  %v1015_v54 = vld [vmem:[#allocation10 + $0x18] sm:$0xff]  ;;  %v1018_v59 = vld [vmem:[#allocation10 + $0x30] sm:$0xff] }
 0x38f   : > { %v1465_v55 = vpack.c.bf16 %v1015_v54, %v1014_v51  ;;  %v1019_v60 = vld [vmem:[#allocation10 + $0x38] sm:$0xff] }
 0x390   : > { %v693_v62 = vmul.f32 1.442695, %v690_v61  ;;  %v1471_v61 = vpack.c.bf16 %v1019_v60, %v1018_v59 }
 0x392   : > { %1588 = vpow2.f32 %v693_v62 }
 0x398   : > { %v1587_v63 = vpop.eup %1586 }
 0x399   : > { %v695_v1 = vsel %vm597_vm1, %v1587_v63, 0.0 }
 0x39a   : > { %696 = vadd.xlane.f32.xlu0 %v695_v1 }
 0x39c   : > { %v1589_v2 = vpop.eup %1588 }
 0x39d   : > { %v698_v3 = vsel %vm597_vm1, %v1589_v2, 0.0 }
 0x39e   : > { %699 = vadd.xlane.f32.xlu1 %v698_v3 }
 0x3af   : > { %1572 = vrot.lane.b32.xlu1 %v2245_v48, %s1872_s19 }
 0x3b3   : > { %1577 = vrot.lane.b32.xlu1 %v2245_v48, %s1871_s18 }
 0x3b7   : > { %799 = vrot.lane.b32.xlu1 %v584_v42, %s1872_s19 }
 0x3bb   : > { %801 = vrot.lane.b32.xlu1 %v596_v49, %s1872_s19 }
 0x427   : > { %v697_v4 = vpop.xlane.xlu0 %696 }
 0x428   : > { %1590 = vrcp.f32 %v697_v4 }
 0x42b   : > { %v700_v5 = vpop.xlane.xlu1 %699 }
 0x42c   : > { %1592 = vrcp.f32 %v700_v5 }
 0x42f   : > { %v1573_v6 = vpop.permute.xlu1 %1572 }
 0x430   : > { %v1575_v7 = vunpack.i.h.bf16 %v1573_v6  ;;  %v1574_v8 = vunpack.i.l.bf16 %v1573_v6 }
 0x432   : > { %v1591_v9 = vpop.eup %1590  ;;  %v1447_v10 = vpack.c.bf16 %v1575_v7, %v1574_v8 }
 0x433   : > { %v1578_v11 = vpop.permute.xlu1 %1577  ;;  %v703_v12 = vmul.f32 %v1591_v9, %v1587_v63 }
 0x434   : > { %v1580_v13 = vunpack.i.h.bf16 %v1578_v11  ;;  %v1579_v14 = vunpack.i.l.bf16 %v1578_v11  ;;  %1448 = vmatprep.subr.bf16.mxu1 %v1447_v10 }
 0x435   : > { %1450 = vmatpush3.bf16.msra.mxu1 %v1447_v10  ;;  %1389 = vmatprep.mubr.msk.f32.mxu1 %vm597_vm1, %v703_v12 }
 0x436   : > { %v1593_v15 = vpop.eup %1592  ;;  %v1451_v16 = vpack.c.bf16 %v1580_v13, %v1579_v14 }
 0x437   : > { %v704_v17 = vmul.f32 %v1593_v15, %v1589_v2  ;;  %v800_v18 = vpop.permute.xlu1 %799 }
 0x438   : > { %1453 = vmatprep.subr.msk.bf16.mxu1 %vm2241_vm2, %v1451_v16 }
 0x439   : > { %1390 = vmatmul.mubr.msk.f32.vlgmr.msra.gmra.mrb[2].mxu1 %vm597_vm1, %v704_v17 }
 0x43a   : > { %1396 = vmatprep.mubr.msk.f32.mxu1 %vm597_vm1, %v800_v18 }
 0x43b   : > { %v802_v19 = vpop.permute.xlu1 %801 }
 0x43e   : > { %1456 = vmatpush3.bf16.xpose.msk.msra.mxu1 %vm2241_vm2, %v1451_v16 }
 0x445   : > { %1397 = vmatmul.mubr.msk.f32.vlgmr.msra.gmra.mrb[4].mxu1 %vm597_vm1, %v802_v19 }
 0x50c   : > { %v1391_v20 = vpop.f32.mrb[2].mxu1 }
 0x50d   : > { %v783_v21 = vpop.f32.mrb[3].mxu1 }
 0x50e   : > { %792 = vst.msk [vmem:[#allocation2] sm:$0xff] %vm597_vm1, %v783_v21 }
 0x518   : > { %v1398_v22 = vpop.f32.mrb[4].mxu1 }
 0x519   : > { %v887_v23 = vadd.f32 %v1398_v22, %v594_v50  ;;  %v881_v24 = vpop.f32.mrb[5].mxu1 }
 0x51a   : > { %v882_v25 = vadd.f32 %v881_v24, %v594_v50  ;;  %v1013_v50 = vld [vmem:[#allocation10 + $0x8] sm:$0xff] }
 0x51b   : > { %v893_v26 = vsel %vm597_vm1, %v887_v23, -inf }
 0x51c   : > { %894 = vmax.xlane.f32.xlu1 %v893_v26  ;;  %v890_v27 = vsel %vm597_vm1, %v882_v25, -inf }
 0x51d   : > { %891 = vmax.xlane.f32.xlu0 %v890_v27 }
 0x5a9   : > { %v895_v28 = vpop.xlane.xlu1 %894 }
 0x5aa   : > { %v897_v29 = vsub.f32 %v887_v23, %v895_v28  ;;  %v892_v30 = vpop.xlane.xlu0 %891 }
 0x5ab   : > { %v896_v31 = vsub.f32 %v882_v25, %v892_v30 }
 0x5ac   : > { %v900_v32 = vmul.f32 1.442695, %v897_v29 }
 0x5ad   : > { %v898_v33 = vmul.f32 1.442695, %v896_v31 }
 0x5ae   : > { %1594 = vpow2.f32 %v900_v32 }
 0x5af   : > { %1596 = vpow2.f32 %v898_v33 }
 0x5b8   : > { %v1595_v34 = vpop.eup %1594 }
 0x5b9   : > { %v905_v35 = vsel %vm597_vm1, %v1595_v34, 0.0  ;;  %v1597_v36 = vpop.eup %1596 }
 0x5ba   : > { %906 = vadd.xlane.f32.xlu0 %v905_v35  ;;  %v902_v37 = vsel %vm597_vm1, %v1597_v36, 0.0 }
 0x5be   : > { %903 = vadd.xlane.f32.xlu0 %v902_v37 }
 0x5d4   : > { %1582 = vrot.lane.b32.xlu0 %v2245_v48, %s1873_s20  ;;  %v1012_v48 = vld [vmem:[#allocation10] sm:$0xff] }
 0x5d5   : > { %v1462_v53 = vpack.c.bf16 %v1013_v50, %v1012_v48 }
 0x5d7   : > { %1463 = vmatpush3.bf16.msra.mxu0 %v1462_v53 }
 0x5d8   : > { %794 = vrot.lane.b32.xlu0 %v1391_v20, %s1874_s17  ;;  %1464 = vmatprep.subr.bf16.mxu0 %v1875_v52 }
 0x5db   : > { %1466 = vmatpush3.bf16.msra.mxu0 %v1465_v55 }
 0x5dc   : > { %1467 = vmatprep.subr.bf16.mxu0 %v1875_v52 }
 0x5df   : > { %1469 = vmatpush3.bf16.msra.mxu0 %v1468_v58 }
 0x5e0   : > { %1470 = vmatprep.subr.bf16.mxu0 %v1875_v52 }
 0x5e3   : > { %1472 = vmatpush3.bf16.msra.mxu0 %v1471_v61 }
 0x647   : > { %v907_v38 = vpop.xlane.xlu0 %906 }
 0x648   : > { %1598 = vrcp.f32 %v907_v38 }
 0x64b   : > { %v904_v39 = vpop.xlane.xlu0 %903 }
 0x64c   : > { %1600 = vrcp.f32 %v904_v39 }
 0x64f   : > { %v1583_v40 = vpop.permute.xlu0 %1582 }
 0x650   : > { %v1585_v41 = vunpack.i.h.bf16 %v1583_v40  ;;  %v1584_v42 = vunpack.i.l.bf16 %v1583_v40 }
 0x652   : > { %v1457_v43 = vpack.c.bf16 %v1585_v41, %v1584_v42  ;;  %v1599_v45 = vpop.eup %1598 }
 0x653   : > { %v795_v44 = vpop.permute.xlu0 %794  ;;  %v911_v49 = vmul.f32 %v1599_v45, %v1595_v34 }
 0x654   : > { %798 = vst.msk [vmem:[#allocation2] sm:$0xff] %vm797_vm3, %v795_v44  ;;  %1458 = vmatprep.subr.bf16.mxu1 %v1457_v43 }
 0x655   : > { %1460 = vmatpush3.bf16.msra.mxu1 %v1457_v43 }
 0x656   : > { %v1601_v46 = vpop.eup %1600 }
 0x657   : > { %v910_v47 = vmul.f32 %v1601_v46, %v1597_v36 }
 0x659   : > { %1403 = vmatprep.mubr.msk.f32.mxu1 %vm597_vm1, %v910_v47 }
 0x65a   : > { %1404 = vmatmul.mubr.msk.f32.vlgmr.msra.gmra.mrb[6].mxu1 %vm597_vm1, %v911_v49 }
 0x72d   : > { %v1405_v62 = vpop.f32.mrb[6].mxu1 }
 0x72e   : > { %1006 = vrot.lane.b32.xlu1 %v1405_v62, %s1877_s11  ;;  %v990_v63 = vpop.f32.mrb[7].mxu1 }
 0x72f   : > { %1000 = vrot.lane.b32.xlu0 %v990_v63, %s1878_s14 }
 0x7a0   : > { %v1007_v2 = vpop.permute.xlu1 %1006 }
 0x7a1   : > { %v1001_v1 = vpop.permute.xlu0 %1000 }
 0x7a2   : > { %1004 = vst.msk [vmem:[#allocation2] sm:$0xff] %vm1003_vm5, %v1001_v1 }
 0x7a3   : > { %1010 = vst.msk [vmem:[#allocation2] sm:$0xff] %vm1009_vm6, %v1007_v2 }
 0x7aa   : > { %v1011_v3 = vld [vmem:[#allocation2] sm:$0xff] }
 0x7ab   : > { %1423 = vmatmul.mubr.msk.f32.vlgmr.msra.gmra.mrb[2].mxu0 %vm504_vm0, %v1011_v3 }
 0x7ac   : > { %1761 = shalt.err (!%p1758_p12)
}
 0x7ad   : > { %s1762_s13 = scalar_lea.hbm %s2284_s29, 256  ;;  %s1766_s22 = scalar_lea.hbm %s2374_s9, 512 }
 0x7ae   : > { %p1763_p6 = scmp.ne.s32.totalorder %s2284_s29, %s1762_s13  ;;  %p1767_p4 = scmp.lt.u32.totalorder %s2284_s29, %s2374_s9 }
 0x7af   : > { %p1768_p9 = scmp.lt.u32.totalorder %s1766_s22, %s1762_s13  ;;  %p1770_p7 = scmp.lt.u32.totalorder %s1762_s13, %s2284_s29 }
 0x7b0   : > { %p1764_p8 = pnand %p1763_p6, %p2421_p11 }
 0x7b1   : > { %p1769_p3 = por %p1768_p9, %p1767_p4 }
 0x7b2   : > { %p1765_p13 = pneg %p1764_p8 }
 0x7b3   : > { %p1771_p10 = por %p1770_p7, %p1769_p3 }
 0x7b5   : > { %p1772_p5 = pnand %p1771_p10, %p1765_p13 }
 0x7b7   : > { %1775 = shalt.err (!%p1772_p5)
}
 0x7b8   : > { %s1880_s20 = smov 128   ;;  %s1881_s17 = smov 8  }
 0x7b9   : > { %1488 = dma.vmem_to_hbm [thread:$0]  (%p2421_p11), %s2286_s8, 256, %s2284_s29, %s1107_s23, %s1880_s20, %s1880_s20, %s1881_s17  }
 0x7ba   : > { %s2422_s7 = sld [smem:[#allocation28_spill]]  ;;  %s1347_s26 = sshll.u32 %s2032_s21, 7 }
 0x7bb   : > { %s463_s28 = scalar_lea.vmem [#allocation11], %s2188_s3  ;;  %s2423_s12 = sld [smem:[#allocation29_spill]] }
 0x7bc   : > { %s1120_s15 = sshll.u32 %s463_s28, 4  ;;  %s1102_s8 = scalar_lea.sflag [#allocation5], %s2185_s27  ;;  %s2322_s15 = int_to_ptr.vmem [resolvable:$true] %s1120_s15 }
 0x7bd   : > { %s1776_s29 = scalar_lea.vmem %s2322_s15, 128  ;;  %s1882_s21 = smov [#allocation11]  }
 0x7be   : > { %p1777_p2 = scmp.ne.s32.totalorder %s2322_s15, %s1776_s29  ;;  %s1780_s3 = sshll.u32 %s1882_s21, 4  ;;  %s1781_s3 = int_to_ptr.vmem [resolvable:$false] %s1780_s3 }
 0x7bf   : > { %s1782_s23 = scalar_lea.vmem %s1781_s3, 256  ;;  %p1783_p12 = scmp.lt.s32.totalorder %s2322_s15, %s1781_s3 }
 0x7c0   : > { %v1343_v0 = vld [vmem:[%s2422_s7] ss:$0 sm:$0xff]  ;;  %p1778_p0 = pnand %p1777_p2, %p2421_p11  ;;  %p1784_p6 = scmp.lt.s32.totalorder %s1782_s23, %s1776_s29 }
 0x7c1   : > { %s2424_s13 = smov %s2423_s12  ;;  %s2320_s30 = scalar_lea.hbm %s2423_s12, %s1347_s26 }
 0x7c2   : > { %p1779_p1 = pneg %p1778_p0  ;;  %p1785_p8 = por %p1784_p6, %p1783_p12 }
 0x7c4   : > { %p1786_p13 = pnand %p1785_p8, %p1779_p1 }
 0x87e   : > { %v1096_v4 = vpop.f32.mrb[2].mxu0 }
 0x87f   : > { %v1097_v5 = vadd.f32 %v1343_v0, %v1096_v4  ;;  %v1424_v6 = vpop.f32.mrb[3].mxu0 }
 0x881   : > { %1100 = vst.msk [vmem:[%s463_s28] sm:$0xff] %vm504_vm0, %v1097_v5 }
 0x882   : > { %1789 = shalt.err (!%p1786_p13)
}
 0x883   : > { %s1790_s27 = scalar_lea.hbm %s2320_s30, 128  ;;  %s1794_s18 = scalar_lea.hbm %s2424_s13, 256 }
 0x884   : > { %p1791_p4 = scmp.ne.s32.totalorder %s2320_s30, %s1790_s27  ;;  %p1795_p7 = scmp.lt.u32.totalorder %s2320_s30, %s2424_s13 }
 0x885   : > { %p1796_p10 = scmp.lt.u32.totalorder %s1794_s18, %s1790_s27  ;;  %p1798_p2 = scmp.lt.u32.totalorder %s1790_s27, %s2320_s30 }
 0x886   : > { %p1792_p9 = pnand %p1791_p4, %p2421_p11 }
 0x887   : > { %p1797_p5 = por %p1796_p10, %p1795_p7 }
 0x888   : > { %p1793_p3 = pneg %p1792_p9 }
 0x889   : > { %p1799_p0 = por %p1798_p2, %p1797_p5 }
 0x88b   : > { %p1800_p1 = pnand %p1799_p0, %p1793_p3 }
 0x88d   : > { %1803 = shalt.err (!%p1800_p1)
}
 0x88e   : > { %1487 = dma.vmem_to_hbm [thread:$0]  (%p2421_p11), %s2322_s15, 128, %s2320_s30, %s1102_s8  }
 0x88f PF: > { %s2425_s17 = sld [smem:[#allocation20_spill]]  ;;  %s2426_s11 = sld [smem:[#allocation25_spill]] }
 0x890   : > { %s2427_s14 = sld [smem:[#allocation22_spill]] }
 0x895   : > { %s1148_s7 = sand.u32 1, %s2425_s17   ;;  %p2428_p12 = scmp.ne.s32.totalorder %s2426_s11, 0 }
 0x896   : > { %p2429_p6 = scmp.ge.s32.totalorder %s2427_s14, 2  ;;  %s1149_s26 = scalar_lea.sflag [#allocation5], %s1148_s7 }
 0x898   : > { %p1509_p8 = pnand %p2429_p6, %p2428_p12 }
 0x89a   : > { %1837 = dma.done.wait (!%p1509_p8), %s1149_s26, 128  }
 0x89b   : > { %1839 = vsyncadd (!%p1509_p8), %s1149_s26, 4294967168  ;;  %s1158_s28 = scalar_lea.sflag [#allocation13], %s1148_s7 }
 0x89c   : > { %1841 = dma.done.wait (!%p1509_p8), %s1158_s28, 256  }
 0x89d   : > { %1843 = vsyncadd (!%p1509_p8), %s1158_s28, 4294967040  ;;  %s2430_s12 = sld [smem:[#allocation23_spill]]  ;;  %s2431_s25 = sld [smem:[#allocation21_spill]] }
 0x89e   : > { %s2432_s11 = sld [smem:[#allocation24_spill]]  ;;  %s2433_s30 = smov %s1850_s10 }
 0x8a3   : > { %p27_p11 = scmp.ge.s32.totalorder %s2430_s12, 4   ;;  %s2434_s10 = smov %s2431_s25 }
 0x8a5   :  { %29 = sbr.rel (!%p27_p11) target bundleno = 13 (0xd), region = 148 }
 0x8ac   :  { %1163 = vsyncpa [#allocation4], 1 }
 0x8ad   :  { %1165 = vsyncpa [#allocation4 + $0x1], 1 }
 0x8ae   :  { %1166 = vsyncpa [#allocation7], 1 }
 0x8af   :  { %1167 = vsyncpa [#allocation5], 1 }
 0x8b0   :  { %1169 = vsyncpa [#allocation5 + $0x1], 1 }
 0x8b1   :  { %1170 = vsyncpa [#allocation13], 1 }
 0x8b2   :  { %1172 = vsyncpa [#allocation13 + $0x1], 1 }

</bundles_post_ra>
